<compile_context>
chip_gen: v6e
topology: v6e:2x2x1
jax: 0.10.0
libtpu: 0.0.40
codegen_flags: <defaults>
</compile_context>

<pallas_src>
import functools

import jax
import jax.numpy as jnp
import numpy as np
from jax.experimental import pallas as pl
from jax.experimental.pallas import tpu as pltpu

EPS = 1e-5
LANE = 128                      # channel (lane) padding granularity
TM_CAP = 256                    # rows per tile (kept small so the toy test exercises
                                # multi-tile grids; sweep 512-1024 at real ResNet sizes;
                                # v7x: keep 2*(TM*K + TM*Cout)*4B + K*Cout*2B < ~24 MiB)
VMEM_LIMIT = 64 * 1024 * 1024   # raised scoped-VMEM limit (v6e/v5e; ~32-48 MiB on v7x)


def _rup(x, m):
    return ((x + m - 1) // m) * m


def _compiler_params():
    return pltpu.CompilerParams(
        dimension_semantics=("parallel",),
        vmem_limit_bytes=VMEM_LIMIT,
    )


# ---------------------------------------------------------------------------
# Pallas kernels
# ---------------------------------------------------------------------------
def _mm_stats_kernel(x_ref, s_ref, b_ref, w_ref, y_ref, st_ref, *,
                     pre_activate, mask_rows, m_true, block_m):
    """y = act(x) @ w (bf16 MXU operands, f32 accumulate) + per-tile BN partial sums.

    act(x) = relu(x * scale + shift) when pre_activate=True (folds the previous
    layer's BatchNorm+ReLU into this kernel's input read), else identity.
    Partial sums: row 0 = colsum(y), row 1 = colsum(y*y) of this tile.
    """
    x = x_ref[...]                                            # (TM, K) f32
    if pre_activate:
        x = jnp.maximum(x * s_ref[...] + b_ref[...], 0.0)
        if mask_rows:                                         # zero padded rows so they
            row = (pl.program_id(0) * block_m                 # don't pollute stats/matmul
                   + jax.lax.broadcasted_iota(jnp.int32, (block_m, 1), 0))
            x = jnp.where(row < m_true, x, 0.0)
    y = jnp.dot(x.astype(jnp.bfloat16), w_ref[...],
                preferred_element_type=jnp.float32)           # (TM, Cout) f32
    y_ref[...] = y
    cout = y.shape[1]
    ssum = jnp.sum(y, axis=0, keepdims=True)
    ssq = jnp.sum(y * y, axis=0, keepdims=True)
    st_ref[...] = jnp.concatenate(
        [ssum, ssq, jnp.zeros((6, cout), jnp.float32)], axis=0)[None]


def _conv3x3_kernel(y1_ref, s_ref, b_ref, w_ref, y2_ref, st_ref, xpad_ref, acc_ref,
                    *, h, w, ho, wo, stride):
    """Fused bn1+relu -> zero-pad -> 3x3 conv (9 shifted MXU matmuls) -> BN partial sums.

    One grid step == one image.  The activated, spatially zero-padded image only
    ever lives in VMEM (no HBM im2col / 9x read amplification).  The image is
    stored at a sublane-aligned column offset (8) so the scratch store is
    aligned; the 9 tap windows are (strided, for stride=2) reads.
    """
    cp = xpad_ref.shape[-1]
    cout = acc_ref.shape[-1]

    xpad_ref[...] = jnp.zeros(xpad_ref.shape, xpad_ref.dtype)
    a = jnp.maximum(
        y1_ref[0] * s_ref[...].reshape(1, 1, cp) + b_ref[...].reshape(1, 1, cp), 0.0)
    xpad_ref[1:h + 1, 8:8 + w, :] = a          # rows padded by 1, cols by 8 (aligned)

    acc_ref[...] = jnp.zeros(acc_ref.shape, acc_ref.dtype)
    for kh in range(3):
        for kw in range(3):
            col0 = 7 + kw                       # unpadded col -1 maps to scratch col 7
            if stride == 1:
                win = xpad_ref[pl.ds(kh, ho), pl.ds(col0, wo), :]
            else:
                win = xpad_ref[pl.ds(kh, ho, stride=stride),
                               pl.ds(col0, wo, stride=stride), :]
            acc_ref[...] += jnp.dot(
                win.reshape(ho * wo, cp).astype(jnp.bfloat16),
                w_ref[kh * 3 + kw],
                preferred_element_type=jnp.float32)

    y2 = acc_ref[...]                                         # (Ho*Wo, Cout) f32
    y2_ref[...] = y2.reshape(1, ho, wo, cout)
    ssum = jnp.sum(y2, axis=0, keepdims=True)
    ssq = jnp.sum(y2 * y2, axis=0, keepdims=True)
    st_ref[...] = jnp.concatenate(
        [ssum, ssq, jnp.zeros((6, cout), jnp.float32)], axis=0)[None]


def _bn_add_relu_kernel(y3_ref, s3_ref, b3_ref, r_ref, sr_ref, br_ref, o_ref):
    """bn3 + (bn_ds|identity residual) + add + final ReLU, all f32."""
    out = (y3_ref[...] * s3_ref[...] + b3_ref[...]
           + r_ref[...] * sr_ref[...] + br_ref[...])
    o_ref[...] = jnp.maximum(out, 0.0)


# ---------------------------------------------------------------------------
# pallas_call wrappers
# ---------------------------------------------------------------------------
def _mm_stats(x2d, scale, shift, w, *, pre_activate, m_true, tm):
    m_pad, k = x2d.shape
    cout = w.shape[1]
    ntiles = m_pad // tm
    kernel = functools.partial(
        _mm_stats_kernel, pre_activate=pre_activate,
        mask_rows=(pre_activate and m_pad != m_true),
        m_true=m_true, block_m=tm)
    y, st = pl.pallas_call(
        kernel,
        grid=(ntiles,),
        in_specs=[
            pl.BlockSpec((tm, k), lambda i: (i, 0)),
            pl.BlockSpec((1, k), lambda i: (0, 0)),
            pl.BlockSpec((1, k), lambda i: (0, 0)),
            pl.BlockSpec((k, cout), lambda i: (0, 0)),
        ],
        out_specs=[
            pl.BlockSpec((tm, cout), lambda i: (i, 0)),
            pl.BlockSpec((1, 8, cout), lambda i: (i, 0, 0)),
        ],
        out_shape=[
            jax.ShapeDtypeStruct((m_pad, cout), jnp.float32),
            jax.ShapeDtypeStruct((ntiles, 8, cout), jnp.float32),
        ],
        compiler_params=_compiler_params(),
    )(x2d, scale, shift, w)
    return y, st


def _conv3x3_stats(y1_img, scale, shift, w2, stride):
    n, h, w, cp = y1_img.shape
    cout = w2.shape[2]
    ho = (h + 2 - 3) // stride + 1
    wo = (w + 2 - 3) // stride + 1
    kernel = functools.partial(_conv3x3_kernel, h=h, w=w, ho=ho, wo=wo, stride=stride)
    y2, st = pl.pallas_call(
        kernel,
        grid=(n,),
        in_specs=[
            pl.BlockSpec((1, h, w, cp), lambda i: (i, 0, 0, 0)),
            pl.BlockSpec((1, cp), lambda i: (0, 0)),
            pl.BlockSpec((1, cp), lambda i: (0, 0)),
            pl.BlockSpec((9, cp, cout), lambda i: (0, 0, 0)),
        ],
        out_specs=[
            pl.BlockSpec((1, ho, wo, cout), lambda i: (i, 0, 0, 0)),
            pl.BlockSpec((1, 8, cout), lambda i: (i, 0, 0)),
        ],
        out_shape=[
            jax.ShapeDtypeStruct((n, ho, wo, cout), jnp.float32),
            jax.ShapeDtypeStruct((n, 8, cout), jnp.float32),
        ],
        scratch_shapes=[
            pltpu.VMEM((h + 2, w + 16, cp), jnp.float32),   # activated, padded image
            pltpu.VMEM((ho * wo, cout), jnp.float32),       # f32 conv accumulator
        ],
        compiler_params=_compiler_params(),
    )(y1_img, scale, shift, w2)
    return y2, st


def _bn_add_relu(y3, s3, b3, res, sr, br, *, tm):
    m_pad, cout = y3.shape
    ntiles = m_pad // tm
    row_spec = pl.BlockSpec((tm, cout), lambda i: (i, 0))
    vec_spec = pl.BlockSpec((1, cout), lambda i: (0, 0))
    return pl.pallas_call(
        _bn_add_relu_kernel,
        grid=(ntiles,),
        in_specs=[row_spec, vec_spec, vec_spec, row_spec, vec_spec, vec_spec],
        out_specs=row_spec,
        out_shape=jax.ShapeDtypeStruct((m_pad, cout), jnp.float32),
        compiler_params=_compiler_params(),
    )(y3, s3, b3, res, sr, br)


# ---------------------------------------------------------------------------
# Plain-JAX glue (tiny per-channel BN finalize, layout/padding only)
# ---------------------------------------------------------------------------
def _finalize_stats(stats, m_true, gamma_p, beta_p):
    tot = jnp.sum(stats[:, 0, :], axis=0)
    tot2 = jnp.sum(stats[:, 1, :], axis=0)
    mean = tot / m_true
    var = jnp.maximum(tot2 / m_true - mean * mean, 0.0)       # biased batch variance
    inv = 1.0 / jnp.sqrt(var + EPS)
    scale = gamma_p * inv
    shift = beta_p - mean * scale
    return scale.reshape(1, -1), shift.reshape(1, -1)


def _pick_tm(m):
    tm = 8
    while tm * 2 <= min(m, TM_CAP):
        tm *= 2
    return tm


def _pad_rows(x2d, tm):
    m = x2d.shape[0]
    m_pad = _rup(m, tm)
    if m_pad != m:
        x2d = jnp.pad(x2d, ((0, m_pad - m), (0, 0)))
    return x2d


def bottleneck_forward(x_nchw, p, stride):
    planes = p["planes"]
    cp_in, cp_mid, cp_out = p["cp_in"], p["cp_mid"], p["cp_out"]

    # TODO(synk): in a real network keep activations NHWC end-to-end; these two
    # layout transposes only exist to preserve the module's NCHW interface.
    x = jnp.transpose(x_nchw, (0, 2, 3, 1)).astype(jnp.float32)       # NCHW -> NHWC
    n, h, w, cin = x.shape
    x = jnp.pad(x, ((0, 0), (0, 0), (0, 0), (0, cp_in - cin)))        # lane-pad channels

    ones_in = jnp.ones((1, cp_in), jnp.float32)
    zeros_in = jnp.zeros((1, cp_in), jnp.float32)

    # conv1 (1x1) + partial bn1 stats
    m1 = n * h * w
    tm1 = _pick_tm(m1)
    x_rows = _pad_rows(x.reshape(m1, cp_in), tm1)
    y1, st1 = _mm_stats(x_rows, ones_in, zeros_in, p["w1"],
                        pre_activate=False, m_true=m1, tm=tm1)
    scale1, shift1 = _finalize_stats(st1, m1, p["g1p"], p["b1p"])

    # conv2 (3x3, stride) with bn1+relu fused into its input read, no HBM im2col
    y1_img = y1[:m1].reshape(n, h, w, cp_mid)
    y2, st2 = _conv3x3_stats(y1_img, scale1, shift1, p["w2"], stride)
    ho, wo = y2.shape[1], y2.shape[2]
    m2 = n * ho * wo
    tm2 = _pick_tm(m2)
    scale2, shift2 = _finalize_stats(st2, m2, p["g2p"], p["b2p"])

    # conv3 (1x1) with bn2+relu fused into its input read
    y2_rows = _pad_rows(y2.reshape(m2, cp_mid), tm2)
    y3, st3 = _mm_stats(y2_rows, scale2, shift2, p["w3"],
                        pre_activate=True, m_true=m2, tm=tm2)
    scale3, shift3 = _finalize_stats(st3, m2, p["g3p"], p["b3p"])

    # residual branch
    if "w_ds" in p:
        x_s = x[:, 0:(ho - 1) * stride + 1:stride, 0:(wo - 1) * stride + 1:stride, :]
        xs_rows = _pad_rows(x_s.reshape(m2, cp_in), tm2)
        yds, stds = _mm_stats(xs_rows, ones_in, zeros_in, p["w_ds"],
                              pre_activate=False, m_true=m2, tm=tm2)
        scale_r, shift_r = _finalize_stats(stds, m2, p["g_dsp"], p["b_dsp"])
        res_rows = yds
    else:
        assert m2 == m1 and cp_in == cp_out
        res_rows = x_rows
        scale_r = jnp.ones((1, cp_out), jnp.float32)
        shift_r = jnp.zeros((1, cp_out), jnp.float32)

    # bn3 + residual add + final relu (fused epilogue)
    out_rows = _bn_add_relu(y3, scale3, shift3, res_rows, scale_r, shift_r, tm=tm2)
    out = out_rows[:m2, :4 * planes].reshape(n, ho, wo, 4 * planes)
    return jnp.transpose(out, (0, 3, 1, 2))                           # NHWC -> NCHW


# ---------------------------------------------------------------------------
# Deterministic parameter init (PyTorch weight layouts, then Pallas layouts)
# ---------------------------------------------------------------------------
def init_params(key, in_planes, planes, stride):
    exp = 4
    ks = jax.random.split(key, 12)
    p = {}
    p["w1_oihw"] = 0.2 * jax.random.normal(ks[0], (planes, in_planes, 1, 1), jnp.float32)
    p["w2_oihw"] = 0.2 * jax.random.normal(ks[1], (planes, planes, 3, 3), jnp.float32)
    p["w3_oihw"] = 0.2 * jax.random.normal(ks[2], (planes * exp, planes, 1, 1), jnp.float32)
    p["g1"] = 1.0 + 0.1 * jax.random.normal(ks[3], (planes,), jnp.float32)
    p["b1"] = 0.1 * jax.random.normal(ks[4], (planes,), jnp.float32)
    p["g2"] = 1.0 + 0.1 * jax.random.normal(ks[5], (planes,), jnp.float32)
    p["b2"] = 0.1 * jax.random.normal(ks[6], (planes,), jnp.float32)
    p["g3"] = 1.0 + 0.1 * jax.random.normal(ks[7], (planes * exp,), jnp.float32)
    p["b3"] = 0.1 * jax.random.normal(ks[8], (planes * exp,), jnp.float32)
    has_ds = stride != 1 or in_planes != planes * exp
    if has_ds:
        p["w_ds_oihw"] = 0.2 * jax.random.normal(ks[9], (planes * exp, in_planes, 1, 1),
                                                 jnp.float32)
        p["g_ds"] = 1.0 + 0.1 * jax.random.normal(ks[10], (planes * exp,), jnp.float32)
        p["b_ds"] = 0.1 * jax.random.normal(ks[11], (planes * exp,), jnp.float32)

    # Pallas-side layouts: channel dims zero-padded to 128 lanes, bf16 weights in
    # matmul layout ((Cin, Cout) for 1x1, (tap, Cin, Cout) for 3x3), padded gamma/beta.
    cp_in, cp_mid, cp_out = _rup(in_planes, LANE), _rup(planes, LANE), _rup(planes * exp, LANE)
    p.update(planes=planes, cp_in=cp_in, cp_mid=cp_mid, cp_out=cp_out)

    def pad2(a, r, c):
        return jnp.pad(a, ((0, r - a.shape[0]), (0, c - a.shape[1])))

    def pad1(a, c):
        return jnp.pad(a, (0, c - a.shape[0]))

    p["w1"] = pad2(p["w1_oihw"][:, :, 0, 0].T, cp_in, cp_mid).astype(jnp.bfloat16)
    w2 = jnp.transpose(p["w2_oihw"], (2, 3, 1, 0)).reshape(9, planes, planes)  # (kh*3+kw, ci, co)
    p["w2"] = jnp.pad(w2, ((0, 0), (0, cp_mid - planes), (0, cp_mid - planes))
                      ).astype(jnp.bfloat16)
    p["w3"] = pad2(p["w3_oihw"][:, :, 0, 0].T, cp_mid, cp_out).astype(jnp.bfloat16)
    p["g1p"], p["b1p"] = pad1(p["g1"], cp_mid), pad1(p["b1"], cp_mid)
    p["g2p"], p["b2p"] = pad1(p["g2"], cp_mid), pad1(p["b2"], cp_mid)
    p["g3p"], p["b3p"] = pad1(p["g3"], cp_out), pad1(p["b3"], cp_out)
    if has_ds:
        p["w_ds"] = pad2(p["w_ds_oihw"][:, :, 0, 0].T, cp_in, cp_out).astype(jnp.bfloat16)
        p["g_dsp"], p["b_dsp"] = pad1(p["g_ds"], cp_out), pad1(p["b_ds"], cp_out)
    return p


# ---------------------------------------------------------------------------
# Pure-JAX references (for correctness checks)
# ---------------------------------------------------------------------------
def _bn_ref(y, g, b):
    mean = y.mean(axis=(0, 1, 2), keepdims=True)
    var = ((y - mean) ** 2).mean(axis=(0, 1, 2), keepdims=True)
    return (y - mean) / jnp.sqrt(var + EPS) * g + b


def reference_forward(x_nchw, p, stride, *, bf16_matmul_operands=False):
    x = jnp.transpose(x_nchw, (0, 2, 3, 1)).astype(jnp.float32)

    def rnd(a):  # mimic the kernels' bf16 MXU operands when requested
        return a.astype(jnp.bfloat16).astype(jnp.float32) if bf16_matmul_operands else a

    def conv(inp, w_oihw, s, pad):
        wt = jnp.transpose(w_oihw, (2, 3, 1, 0))              # OIHW -> HWIO
        return jax.lax.conv_general_dilated(
            rnd(inp), rnd(wt), (s, s), [(pad, pad), (pad, pad)],
            dimension_numbers=("NHWC", "HWIO", "NHWC"))

    out = jax.nn.relu(_bn_ref(conv(x, p["w1_oihw"], 1, 0), p["g1"], p["b1"]))
    out = jax.nn.relu(_bn_ref(conv(out, p["w2_oihw"], stride, 1), p["g2"], p["b2"]))
    out = _bn_ref(conv(out, p["w3_oihw"], 1, 0), p["g3"], p["b3"])
    if "w_ds_oihw" in p:
        res = _bn_ref(conv(x, p["w_ds_oihw"], stride, 0), p["g_ds"], p["b_ds"])
    else:
        res = x
    return jnp.transpose(jax.nn.relu(out + res), (0, 3, 1, 2))


def _check(x, p, stride, expect_shape):
    out = jax.block_until_ready(bottleneck_forward(x, p, stride))
    assert out.shape == expect_shape, out.shape
    # Tight check vs. a reference that rounds matmul operands to bf16 exactly like
    # the kernels do (everything else f32) -> validates stats / taps / fusion.
    ref_bf16 = reference_forward(x, p, stride, bf16_matmul_operands=True)
    np.testing.assert_allclose(np.asarray(out), np.asarray(ref_bf16),
                               atol=1e-2, rtol=1e-2)
    # Looser sanity check vs. the pure-f32 PyTorch-equivalent reference; the slack
    # accounts only for the bf16 MXU operands.
    ref_f32 = reference_forward(x, p, stride)
    np.testing.assert_allclose(np.asarray(out), np.asarray(ref_f32),
                               atol=4e-2, rtol=4e-2)


# ---------------------------------------------------------------------------
if __name__ == "__main__":
    key = jax.random.PRNGKey(0)
    kx1, kp1, kx2, kp2 = jax.random.split(key, 4)

    # Case 1: downsample shortcut active (stride=2, channel expansion)
    in_planes, planes, stride = 8, 4, 2
    x1 = jax.random.normal(kx1, (2, in_planes, 16, 16), jnp.float32)   # NCHW
    p1 = init_params(kp1, in_planes, planes, stride)
    _check(x1, p1, stride, (2, planes * 4, 8, 8))

    # Case 2: identity shortcut (stride=1, in_planes == 4*planes)
    in_planes, planes, stride = 16, 4, 1
    x2 = jax.random.normal(kx2, (2, in_planes, 16, 16), jnp.float32)   # NCHW
    p2 = init_params(kp2, in_planes, planes, stride)
    _check(x2, p2, stride, (2, planes * 4, 16, 16))

    print("KERNEL_OK")
</pallas_src>

<mosaic_0001>
module attributes {stable_mosaic.version = 11 : i64} {
  func.func @_mm_stats_kernel(%arg0: i32, %arg1: memref<256x128xf32, #tpu.memory_space<vmem>>, %arg2: memref<1x128xf32, #tpu.memory_space<vmem>>, %arg3: memref<1x128xf32, #tpu.memory_space<vmem>>, %arg4: memref<128x128xbf16, #tpu.memory_space<vmem>>, %arg5: memref<256x128xf32, #tpu.memory_space<vmem>>, %arg6: memref<1x8x128xf32, #tpu.memory_space<vmem>>) attributes {dimension_semantics = [#tpu.dimension_semantics<parallel>], iteration_bounds = array<i64: 2>, scalar_prefetch = 0 : i64, scratch_operands = 0 : i64, tpu.core_type = #tpu.core_type<tc>, window_params = [{transform_indices = @transform_0, window_bounds = array<i64: 256, 128>}, {pipeline_mode = #tpu.pipeline_mode<synchronous>, transform_indices = @transform_1, window_bounds = array<i64: 1, 128>}, {pipeline_mode = #tpu.pipeline_mode<synchronous>, transform_indices = @transform_2, window_bounds = array<i64: 1, 128>}, {pipeline_mode = #tpu.pipeline_mode<synchronous>, transform_indices = @transform_3, window_bounds = array<i64: 128, 128>}, {transform_indices = @transform_4, window_bounds = array<i64: 256, 128>}, {transform_indices = @transform_5, window_bounds = array<i64: 1, 8, 128>}]} {
    %c0 = arith.constant 0 : index
    %c0_0 = arith.constant 0 : index
    %0 = vector.load %arg1[%c0, %c0_0] : memref<256x128xf32, #tpu.memory_space<vmem>>, vector<256x128xf32>
    %1 = arith.truncf %0 : vector<256x128xf32> to vector<256x128xbf16>
    %c0_1 = arith.constant 0 : index
    %c0_2 = arith.constant 0 : index
    %2 = vector.load %arg4[%c0_1, %c0_2] : memref<128x128xbf16, #tpu.memory_space<vmem>>, vector<128x128xbf16>
    %cst = arith.constant dense<0.000000e+00> : vector<256x128xf32>
    %3 = tpu.matmul %1, %2, %cst {dimension_numbers = #tpu.dot_dimension_numbers<[1], [0], [0], [1], [0, 0, 1, 1], [], []>} : vector<256x128xbf16>, vector<128x128xbf16>, vector<256x128xf32> -> vector<256x128xf32>
    %c0_3 = arith.constant 0 : index
    %c0_4 = arith.constant 0 : index
    %4 = vector.load %arg5[%c0_3, %c0_4] : memref<256x128xf32, #tpu.memory_space<vmem>>, vector<256x128xf32>
    tpu.vector_store %arg5[%c0_3, %c0_4], %3 {strides = array<i32>} : memref<256x128xf32, #tpu.memory_space<vmem>>, vector<256x128xf32>,
    %cst_5 = arith.constant dense<0.000000e+00> : vector<128xf32>
    %5 = vector.multi_reduction <add>, %3, %cst_5 [0] : vector<256x128xf32> to vector<128xf32>
    %6 = vector.shape_cast %5 : vector<128xf32> to vector<1x128xf32>
    %7 = arith.mulf %3, %3 : vector<256x128xf32>
    %cst_6 = arith.constant dense<0.000000e+00> : vector<128xf32>
    %8 = vector.multi_reduction <add>, %7, %cst_6 [0] : vector<256x128xf32> to vector<128xf32>
    %9 = vector.shape_cast %8 : vector<128xf32> to vector<1x128xf32>
    %cst_7 = arith.constant 0.000000e+00 : f32
    %10 = vector.broadcast %cst_7 : f32 to vector<6x128xf32>
    %11 = tpu.concatenate %6, %9, %10 in 0 : vector<1x128xf32>, vector<1x128xf32>, vector<6x128xf32> -> vector<8x128xf32>
    %12 = vector.shape_cast %11 : vector<8x128xf32> to vector<1x8x128xf32>
    %c0_8 = arith.constant 0 : index
    %c0_9 = arith.constant 0 : index
    %c0_10 = arith.constant 0 : index
    %13 = vector.load %arg6[%c0_8, %c0_9, %c0_10] : memref<1x8x128xf32, #tpu.memory_space<vmem>>, vector<1x8x128xf32>
    tpu.vector_store %arg6[%c0_8, %c0_9, %c0_10], %12 {strides = array<i32>} : memref<1x8x128xf32, #tpu.memory_space<vmem>>, vector<1x8x128xf32>,
    return
  }
  func.func @transform_0(%arg0: i32) -> (i32, i32) {
    %c0_i32 = arith.constant 0 : i32
    %c0_i32_0 = arith.constant 0 : i32
    return %arg0, %c0_i32 : i32, i32
  }
  func.func @transform_1(%arg0: i32) -> (i32, i32) {
    %c0_i32 = arith.constant 0 : i32
    %c0_i32_0 = arith.constant 0 : i32
    %c0_i32_1 = arith.constant 0 : i32
    return %c0_i32, %c0_i32_0 : i32, i32
  }
  func.func @transform_2(%arg0: i32) -> (i32, i32) {
    %c0_i32 = arith.constant 0 : i32
    %c0_i32_0 = arith.constant 0 : i32
    %c0_i32_1 = arith.constant 0 : i32
    return %c0_i32, %c0_i32_0 : i32, i32
  }
  func.func @transform_3(%arg0: i32) -> (i32, i32) {
    %c0_i32 = arith.constant 0 : i32
    %c0_i32_0 = arith.constant 0 : i32
    %c0_i32_1 = arith.constant 0 : i32
    return %c0_i32, %c0_i32_0 : i32, i32
  }
  func.func @transform_4(%arg0: i32) -> (i32, i32) {
    %c0_i32 = arith.constant 0 : i32
    %c0_i32_0 = arith.constant 0 : i32
    return %arg0, %c0_i32 : i32, i32
  }
  func.func @transform_5(%arg0: i32) -> (i32, i32, i32) {
    %c0_i32 = arith.constant 0 : i32
    %c0_i32_0 = arith.constant 0 : i32
    %c0_i32_1 = arith.constant 0 : i32
    return %arg0, %c0_i32, %c0_i32_0 : i32, i32, i32
  }
}

</mosaic_0001>

<bundles_post_ra>
// kernel: tpu_custom_call.1
= control target key start
LH: loop header
LB: loop body
LE: loop exit
PB: predicated region body
PF: predicated region fallthrough
CT: control target
= control target key end

     0   :  { %11 = vsyncpa [#allocation3], 0  ;;  %s1592_s0 = inlined_call_operand.hbm [shape: f32[512,128], index: 0, kind: input, shape index: {}]   ;;  %s1593_s1 = inlined_call_operand.vmem [shape: f32[1,128], index: 1, kind: input, shape index: {}]   ;;  %s1594_s2 = inlined_call_operand.vmem [shape: f32[1,128], index: 2, kind: input, shape index: {}]   ;;  %s1595_s3 = inlined_call_operand.hbm [shape: bf16[128,128], index: 3, kind: input, shape index: {}]   ;;  %s1596_s4 = inlined_call_operand.hbm [shape: f32[512,128], index: 4, kind: output, shape index: {0}]   ;;  %s1597_s5 = inlined_call_operand.hbm [shape: f32[2,8,128], index: 5, kind: output, shape index: {1}]  }
   0x1   :  { %13 = vsyncpa [#allocation3 + $0x1], 0 }
   0x2   :  { %14 = vsyncpa [#allocation6], 0 }
   0x3   :  { %15 = vsyncpa [#allocation4], 0 }
   0x4   :  { %17 = vsyncpa [#allocation4 + $0x1], 0 }
   0x5   :  { %18 = vsyncpa [#allocation9], 0 }
   0x6   :  { %20 = vsyncpa [#allocation9 + $0x1], 0  ;;  %s1222_s1 = smov 0   ;;  %s1224_s18 = smov 0  }
   0x7   :  { %s1226_s2 = smov 0   ;;  %s1228_s19 = smov 0  }
   0x8 LB: > { %s1243_s20 = sadd.s32 4294967295, %s1180_s19   ;;  %s835_s21 = sadd.s32 4294967294, %s1180_s19   ;;  %s1180_s19 = sphi %s1228_s19, %s1619_s19   ;;  %s1176_s2 = sphi %s1226_s2, %s1618_s2   ;;  %s1172_s18 = sphi %s1224_s18, %s1617_s18   ;;  %s1168_s1 = sphi %s1222_s1, %s1616_s1  }
   0x9   : > { %p46_p0 = scmp.ne.s32.totalorder %s1172_s18, %s1168_s1  ;;  %p1598_p1 = scmp.eq.s32.totalorder %s1243_s20, 0 }
   0xa   : > { %p139_p3 = scmp.eq.s32.totalorder %s835_s21, 1  ;;  %p836_p5 = scmp.ge.s32.totalorder %s1180_s19, 1 }
   0xb   : > { %p1252_p4 = por %p1598_p1, %p46_p0  ;;  %p172_p7 = scmp.lt.s32.totalorder %s1180_s19, 3 }
   0xc   : > { %p1257_p6 = por %p139_p3, %p46_p0  ;;  %s1182_s25 = smov [#allocation5]  }
   0xd   : > { %s1602_s22 = scalar_select %p1252_p4, 1, 0 }
   0xe   : > { %s1603_s23 = scalar_select %p1257_p6, 1, 0 }
   0xf   : > { %p1262_p8 = pnand %p836_p5, %p172_p7  ;;  %s190_s26 = sshll.u32 %s1182_s25, 4  ;;  %s191_s26 = int_to_ptr.vmem [resolvable:$true] %s190_s26 }
  0x10   : > { %s1276_s28 = sadd.s32 1, %s1180_s19   ;;  %s33_s29 = sadd.s32 1, %s1176_s2 }
  0x11   : > { %s1604_s24 = scalar_select %p1262_p8, 1, 0 }
  0x12   : > { %p962_p9 = pneg %p1262_p8  ;;  %s30_s30 = ssub.s32 %s1180_s19, %s1276_s28 }
  0x13   : > { %s1039_s6 = scalar_lea.vmem %s191_s26, 1024  ;;  %p1047_p5 = scmp.lt.s32.totalorder %s191_s26, %s191_s26 }
  0x14   : > { %p1271_p11 = pnand %p962_p9, %p1598_p1  ;;  %p1040_p13 = scmp.ne.s32.totalorder %s191_s26, %s1039_s6 }
  0x15   : > { %p1048_p7 = scmp.lt.s32.totalorder %s1039_s6, %s1039_s6 }
  0x16   : > { %p1030_p12 = pneg %p1271_p11 }
  0x17   : > { %p1049_p10 = por %p1048_p7, %p1047_p5 }
  0x18   : > { %p1042_p0 = pnand %p1040_p13, %p1030_p12 }
  0x1a   : > { %p1043_p3 = pneg %p1042_p0 }
  0x1c   : > { %p1050_p2 = pnand %p1049_p10, %p1043_p3 }
  0x1e   : > { %1053 = shalt.err (!%p1050_p2)
}
  0x1f   : > { %s1183_s7 = smov 64   ;;  %s1184_s8 = smov 4  }
  0x20   : > { %965 = dma.hbm_to_vmem [thread:$0]  (!%p1271_p11), %s1595_s3, 1024, %s191_s26, [#allocation6], %s1183_s7, %s1183_s7, %s1184_s8  }
  0x21   : > { %p31_p9 = scmp.eq.s32.totalorder %s30_s30, 0  ;;  %p40_p12 = scmp.ne.s32.totalorder %s1176_s2, %s1172_s18 }
  0x22   : > { %p41_p10 = scmp.eq.s32.totalorder %s1180_s19, 0  ;;  %p978_p2 = scmp.lt.s32.totalorder %s1180_s19, 2 }
  0x23   : > { %s1293_s11 = scalar_select %p31_p9, %s1176_s2, %s33_s29  }
  0x24   : > { %p42_p13 = por %p41_p10, %p40_p12  ;;  %p1606_p0 = scmp.eq.s32.totalorder %s1243_s20, 1 }
  0x25   : > { %s204_s13 = sand.u32 1, %s1176_s2   ;;  %s862_s14 = sshll.u32 %s1180_s19, 12 }
  0x26   : > { %p1297_p3 = por %p1606_p0, %p40_p12  ;;  %s839_s15 = sshll.u32 %s204_s13, 8 }
  0x27   : > { %s1306_s21 = scalar_lea.hbm %s1592_s0, %s862_s14  ;;  %s208_s25 = scalar_lea.vmem [#allocation2], %s839_s15 }
  0x28   : > { %s1607_s12 = scalar_select %p1297_p3, 1, 0 }
  0x29   : > { %s215_s26 = sshll.u32 %s208_s25, 4  ;;  %p1308_p11 = pnand %p978_p2, %p42_p13  ;;  %s1312_s26 = int_to_ptr.vmem [resolvable:$true] %s215_s26 }
  0x2a   : > { %s1314_s29 = scalar_lea.sflag [#allocation3], %s204_s13  ;;  %s1054_s30 = scalar_lea.hbm %s1306_s21, 4096 }
  0x2b   : > { %p1055_p5 = scmp.ne.s32.totalorder %s1306_s21, %s1054_s30  ;;  %p1056_p7 = pneg %p1308_p11 }
  0x2c   : > { %s1059_s8 = scalar_lea.hbm %s1592_s0, 8192  ;;  %p1060_p10 = scmp.lt.s32.totalorder %s1306_s21, %s1592_s0 }
  0x2d   : > { %p1057_p9 = pnand %p1056_p7, %p1055_p5  ;;  %p1061_p2 = scmp.lt.s32.totalorder %s1059_s8, %s1054_s30 }
  0x2f   : > { %p1058_p12 = pneg %p1057_p9  ;;  %p1062_p13 = por %p1061_p2, %p1060_p10 }
  0x31   : > { %p1063_p0 = pnand %p1062_p13, %p1058_p12 }
  0x33   : > { %1066 = shalt.err (!%p1063_p0)
}
  0x34   : > { %s1067_s13 = scalar_lea.vmem %s1312_s26, 4096  ;;  %s1185_s14 = smov [#allocation2]  }
  0x35   : > { %p1068_p1 = scmp.ne.s32.totalorder %s1312_s26, %s1067_s13  ;;  %s1072_s15 = sshll.u32 %s1185_s14, 4  ;;  %s1073_s15 = int_to_ptr.vmem [resolvable:$false] %s1072_s15 }
  0x36   : > { %s1074_s16 = scalar_lea.vmem %s1073_s15, 8192  ;;  %p1075_p9 = scmp.lt.s32.totalorder %s1312_s26, %s1073_s15 }
  0x37   : > { %p1070_p6 = pnand %p1068_p1, %p1056_p7  ;;  %p1076_p3 = scmp.lt.s32.totalorder %s1074_s16, %s1067_s13 }
  0x39   : > { %p1071_p5 = pneg %p1070_p6  ;;  %p1077_p4 = por %p1076_p3, %p1075_p9 }
  0x3b   : > { %p1078_p8 = pnand %p1077_p4, %p1071_p5 }
  0x3d   : > { %1081 = shalt.err (!%p1078_p8)
}
  0x3e   : > { %s1186_s17 = smov 128   ;;  %s1187_s25 = smov 8  }
  0x3f   : > { %969 = dma.hbm_to_vmem [thread:$0]  (!%p1308_p11), %s1306_s21, 4096, %s1312_s26, %s1314_s29, %s1186_s17, %s1186_s17, %s1187_s25  }
  0x40   : > { %p1609_p1 = scmp.ne.s32.totalorder %s1604_s24, 0 }
  0x41   : > { %s1338_s30 = sand.u32 (!%p1609_p1), 1, %s1172_s18   ;;  %p1610_p4 = scmp.ne.s32.totalorder (!%p1609_p1), %s1602_s22, 0 }
  0x42   : > { %227 = sbr.rel (%p1609_p1) target bundleno = 408 (0x198), region = 36  ;;  %s843_s6 = sshll.u32 (!%p1609_p1), %s1338_s30, 8 }
  0x43   : > { %s230_s7 = scalar_lea.sflag (!%p1609_p1), [#allocation3], %s1338_s30  ;;  %s1344_s8 = scalar_lea.vmem (!%p1609_p1), [#allocation2], %s843_s6 }
  0x47   : > { %1151 = dma.done.wait (%p1610_p4), %s230_s7, 4096  }
  0x48   : > { %1153 = vsyncadd (%p1610_p4), %s230_s7, 4294963200  ;;  %p1611_p6 = scmp.eq.s32.totalorder %s1243_s20, 0 }
  0x4a   : > { %1155 = dma.done.wait (%p1611_p6), [#allocation6], 1024   ;;  %p1612_p8 = pmov %p1611_p6 }
  0x4b   : > { %v1020_v0 = vld [vmem:[#allocation5 + $0x38] sm:$0xff]   ;;  %v1021_v1 = vld [vmem:[#allocation5 + $0x30] sm:$0xff]   ;;  %v1022_v2 = vld [vmem:[#allocation5 + $0x28] sm:$0xff]   ;;  %s1388_s22 = scalar_lea.vmem [#allocation7], %s843_s6  ;;  %s863_s24 = sshll.u32 %s1243_s20, 12 }
  0x4c   : > { %1157 = vsyncadd (%p1612_p8), [#allocation6], 4294966272  ;;  %888 = vmatprep.subr.bf16.mxu0 %v1020_v0  ;;  %936 = vmatprep.subr.bf16.mxu1 %v1020_v0  ;;  %v1023_v3 = vld [vmem:[#allocation5 + $0x20] sm:$0xff]   ;;  %v273_v5 = vld [vmem:[%s1344_s8 + $0x8] sm:$0xff]  ;;  %s707_s21 = sshll.u32 %s1388_s22, 4  ;;  %s1468_s29 = scalar_lea.hbm %s1596_s4, %s863_s24  ;;  %s1470_s21 = int_to_ptr.vmem [resolvable:$true] %s707_s21 }
  0x4d   : > { %889 = vmatpush3.bf16.msra.mxu0 %v1020_v0  ;;  %944 = vmatpush3.bf16.msra.mxu1 %v1020_v0  ;;  %v272_v4 = vld [vmem:[%s1344_s8] sm:$0xff]  ;;  %v1024_v7 = vld [vmem:[#allocation5 + $0x18] sm:$0xff]   ;;  %v289_v9 = vld [vmem:[%s1344_s8 + $0x88] sm:$0xff]  ;;  %s689_s9 = scalar_lea.sflag [#allocation4], %s1338_s30  ;;  %s1082_s10 = scalar_lea.vmem %s1470_s21, 4096 }
  0x4e   : > { %890 = vmatprep.subr.bf16.mxu0 %v1021_v1  ;;  %937 = vmatprep.subr.bf16.mxu1 %v1021_v1  ;;  %v304_v6 = vpack.c.bf16 %v273_v5, %v272_v4  ;;  %v288_v8 = vld [vmem:[%s1344_s8 + $0x80] sm:$0xff]  ;;  %v1025_v11 = vld [vmem:[#allocation5 + $0x10] sm:$0xff]   ;;  %v1026_v12 = vld [vmem:[#allocation5 + $0x8] sm:$0xff]   ;;  %p1083_p3 = scmp.ne.s32.totalorder %s1470_s21, %s1082_s10  ;;  %p1613_p11 = scmp.ne.s32.totalorder %s1607_s12, 0 }
  0x4f   : > { %v312_v10 = vpack.c.bf16 %v289_v9, %v288_v8  ;;  %v1027_v13 = vld [vmem:[#allocation5] sm:$0xff]   ;;  %v274_v14 = vld [vmem:[%s1344_s8 + $0x10] sm:$0xff]  ;;  %v275_v15 = vld [vmem:[%s1344_s8 + $0x18] sm:$0xff]  ;;  %s1188_s13 = smov [#allocation7]  }
  0x50   : > { %904 = vmatprep.mubr.bf16.mxu0 %v304_v6  ;;  %v276_v16 = vld [vmem:[%s1344_s8 + $0x20] sm:$0xff]  ;;  %v277_v17 = vld [vmem:[%s1344_s8 + $0x28] sm:$0xff]  ;;  %v290_v18 = vld [vmem:[%s1344_s8 + $0x90] sm:$0xff]  ;;  %v305_v22 = vpack.c.bf16 %v275_v15, %v274_v14  ;;  %p1084_p7 = pnand %p1083_p3, %p1613_p11  ;;  %s1086_s14 = sshll.u32 %s1188_s13, 4  ;;  %s1087_s14 = int_to_ptr.vmem [resolvable:$false] %s1086_s14 }
  0x51   : > { %891 = vmatpush3.bf16.msra.mxu0 %v1021_v1  ;;  %945 = vmatpush3.bf16.msra.mxu1 %v1021_v1  ;;  %v291_v19 = vld [vmem:[%s1344_s8 + $0x98] sm:$0xff]  ;;  %v292_v20 = vld [vmem:[%s1344_s8 + $0xa0] sm:$0xff]  ;;  %v293_v21 = vld [vmem:[%s1344_s8 + $0xa8] sm:$0xff]  ;;  %v306_v23 = vpack.c.bf16 %v277_v17, %v276_v16  ;;  %s1088_s15 = scalar_lea.vmem %s1087_s14, 8192  ;;  %p1089_p10 = scmp.lt.s32.totalorder %s1470_s21, %s1087_s14 }
  0x52   : > { %892 = vmatprep.subr.bf16.mxu0 %v1022_v2  ;;  %938 = vmatprep.subr.bf16.mxu1 %v1022_v2  ;;  %v313_v24 = vpack.c.bf16 %v291_v19, %v290_v18  ;;  %v314_v25 = vpack.c.bf16 %v293_v21, %v292_v20  ;;  %v278_v26 = vld [vmem:[%s1344_s8 + $0x30] sm:$0xff]  ;;  %v279_v27 = vld [vmem:[%s1344_s8 + $0x38] sm:$0xff]  ;;  %v280_v28 = vld [vmem:[%s1344_s8 + $0x40] sm:$0xff]  ;;  %p1085_p12 = pneg %p1084_p7  ;;  %p1090_p2 = scmp.lt.s32.totalorder %s1088_s15, %s1082_s10 }
  0x53   : > { %920 = vmatprep.mubr.bf16.mxu1 %v312_v10  ;;  %v281_v29 = vld [vmem:[%s1344_s8 + $0x48] sm:$0xff]  ;;  %v294_v30 = vld [vmem:[%s1344_s8 + $0xb0] sm:$0xff]  ;;  %v295_v31 = vld [vmem:[%s1344_s8 + $0xb8] sm:$0xff]  ;;  %v307_v34 = vpack.c.bf16 %v279_v27, %v278_v26 }
  0x54   : > { %v296_v32 = vld [vmem:[%s1344_s8 + $0xc0] sm:$0xff]  ;;  %v297_v33 = vld [vmem:[%s1344_s8 + $0xc8] sm:$0xff]  ;;  %v308_v35 = vpack.c.bf16 %v281_v29, %v280_v28  ;;  %v315_v36 = vpack.c.bf16 %v295_v31, %v294_v30  ;;  %v282_v38 = vld [vmem:[%s1344_s8 + $0x50] sm:$0xff]  ;;  %p1091_p13 = por %p1090_p2, %p1089_p10 }
  0x55   : > { %893 = vmatpush3.bf16.msra.mxu0 %v1022_v2  ;;  %946 = vmatpush3.bf16.msra.mxu1 %v1022_v2  ;;  %v316_v37 = vpack.c.bf16 %v297_v33, %v296_v32  ;;  %v283_v39 = vld [vmem:[%s1344_s8 + $0x58] sm:$0xff]  ;;  %v284_v40 = vld [vmem:[%s1344_s8 + $0x60] sm:$0xff]  ;;  %v285_v41 = vld [vmem:[%s1344_s8 + $0x68] sm:$0xff] }
  0x56   : > { %894 = vmatprep.subr.bf16.mxu0 %v1023_v3  ;;  %939 = vmatprep.subr.bf16.mxu1 %v1023_v3  ;;  %v298_v42 = vld [vmem:[%s1344_s8 + $0xd0] sm:$0xff]  ;;  %v299_v43 = vld [vmem:[%s1344_s8 + $0xd8] sm:$0xff]  ;;  %v300_v44 = vld [vmem:[%s1344_s8 + $0xe0] sm:$0xff]  ;;  %v309_v46 = vpack.c.bf16 %v283_v39, %v282_v38  ;;  %v310_v47 = vpack.c.bf16 %v285_v41, %v284_v40  ;;  %p1092_p0 = pnand %p1091_p13, %p1085_p12 }
  0x57   : > { %v301_v45 = vld [vmem:[%s1344_s8 + $0xe8] sm:$0xff]  ;;  %v317_v48 = vpack.c.bf16 %v299_v43, %v298_v42  ;;  %v286_v50 = vld [vmem:[%s1344_s8 + $0x70] sm:$0xff]  ;;  %v287_v51 = vld [vmem:[%s1344_s8 + $0x78] sm:$0xff] }
  0x58   : > { %v318_v49 = vpack.c.bf16 %v301_v45, %v300_v44  ;;  %v302_v52 = vld [vmem:[%s1344_s8 + $0xf0] sm:$0xff]  ;;  %v303_v53 = vld [vmem:[%s1344_s8 + $0xf8] sm:$0xff]  ;;  %v311_v54 = vpack.c.bf16 %v287_v51, %v286_v50 }
  0x59   : > { %895 = vmatpush3.bf16.msra.mxu0 %v1023_v3  ;;  %947 = vmatpush3.bf16.msra.mxu1 %v1023_v3  ;;  %v319_v55 = vpack.c.bf16 %v303_v53, %v302_v52 }
  0x5a   : > { %896 = vmatprep.subr.bf16.mxu0 %v1024_v7  ;;  %940 = vmatprep.subr.bf16.mxu1 %v1024_v7 }
  0x5d   : > { %897 = vmatpush3.bf16.msra.mxu0 %v1024_v7  ;;  %948 = vmatpush3.bf16.msra.mxu1 %v1024_v7 }
  0x5e   : > { %898 = vmatprep.subr.bf16.mxu0 %v1025_v11  ;;  %941 = vmatprep.subr.bf16.mxu1 %v1025_v11 }
  0x61   : > { %899 = vmatpush3.bf16.msra.mxu0 %v1025_v11  ;;  %949 = vmatpush3.bf16.msra.mxu1 %v1025_v11 }
  0x62   : > { %900 = vmatprep.subr.bf16.mxu0 %v1026_v12  ;;  %942 = vmatprep.subr.bf16.mxu1 %v1026_v12 }
  0x65   : > { %901 = vmatpush3.bf16.msra.mxu0 %v1026_v12  ;;  %950 = vmatpush3.bf16.msra.mxu1 %v1026_v12 }
  0x66   : > { %902 = vmatprep.subr.bf16.mxu0 %v1027_v13  ;;  %943 = vmatprep.subr.bf16.mxu1 %v1027_v13 }
  0x69   : > { %903 = vmatpush3.bf16.msra.mxu0 %v1027_v13  ;;  %951 = vmatpush3.bf16.msra.mxu1 %v1027_v13 }
  0x6c   : > { %905 = vmatmul.mubr.bf16.vlgmr.msra.gmra.mxu0 %v305_v22  ;;  %921 = vmatmul.mubr.bf16.vlgmr.msra.gmra.mxu1 %v313_v24 }
  0x6d   : > { %908 = vmatprep.mubr.bf16.mxu0 %v306_v23  ;;  %924 = vmatprep.mubr.bf16.mxu1 %v314_v25 }
  0x74   : > { %909 = vmatmul.mubr.bf16.gmra.mxu0 %v307_v34  ;;  %925 = vmatmul.mubr.bf16.gmra.mxu1 %v315_v36 }
  0x75   : > { %912 = vmatprep.mubr.bf16.mxu0 %v308_v35  ;;  %928 = vmatprep.mubr.bf16.mxu1 %v316_v37 }
  0x7c   : > { %913 = vmatmul.mubr.bf16.gmra.mxu0 %v309_v46  ;;  %929 = vmatmul.mubr.bf16.gmra.mxu1 %v317_v48 }
  0x7d   : > { %916 = vmatprep.mubr.bf16.mxu0 %v310_v47  ;;  %932 = vmatprep.mubr.bf16.mxu1 %v318_v49 }
  0x84   : > { %917 = vmatmul.mubr.bf16.gmra.mxu0 %v311_v54  ;;  %933 = vmatmul.mubr.bf16.gmra.mxu1 %v319_v55 }
 0x12c   : > { %v906_v56 = vpop.f32.mrf.mxu0  ;;  %v1391_v57 = vpop.f32.mrf.mxu1 }
 0x12d   : > { %547 = vst [vmem:[%s1388_s22 + $0x10] sm:$0xff] %v906_v56  ;;  %563 = vst [vmem:[%s1388_s22 + $0x90] sm:$0xff] %v1391_v57  ;;  %v616_v4 = vmul.f32 %v906_v56, %v906_v56 }
 0x12e   : > { %v418_v58 = vpop.f32.mrf.mxu0  ;;  %v1396_v59 = vpop.f32.mrf.mxu1 }
 0x12f   : > { %545 = vst [vmem:[%s1388_s22] sm:$0xff] %v418_v58  ;;  %561 = vst [vmem:[%s1388_s22 + $0x80] sm:$0xff] %v1396_v59  ;;  %v614_v63 = vmul.f32 %v418_v58, %v418_v58 }
 0x130   : > { %v907_v60 = vpop.f32.mrf.mxu0  ;;  %v1401_v61 = vpop.f32.mrf.mxu1 }
 0x131   : > { %548 = vst [vmem:[%s1388_s22 + $0x18] sm:$0xff] %v907_v60  ;;  %564 = vst [vmem:[%s1388_s22 + $0x98] sm:$0xff] %v1401_v61  ;;  %v617_v9 = vmul.f32 %v907_v60, %v907_v60 }
 0x132   : > { %v421_v62 = vpop.f32.mrf.mxu0  ;;  %v1406_v2 = vpop.f32.mrf.mxu1 }
 0x133   : > { %546 = vst [vmem:[%s1388_s22 + $0x8] sm:$0xff] %v421_v62  ;;  %v577_v0 = vadd.f32 %v421_v62, %v418_v58  ;;  %v615_v1 = vmul.f32 %v421_v62, %v421_v62  ;;  %562 = vst [vmem:[%s1388_s22 + $0x88] sm:$0xff] %v1406_v2 }
 0x134   : > { %v910_v3 = vpop.f32.mrf.mxu0  ;;  %v1411_v7 = vpop.f32.mrf.mxu1 }
 0x135   : > { %v578_v5 = vadd.f32 %v906_v56, %v577_v0  ;;  %v646_v6 = vadd.f32 %v615_v1, %v614_v63  ;;  %551 = vst [vmem:[%s1388_s22 + $0x30] sm:$0xff] %v910_v3  ;;  %567 = vst [vmem:[%s1388_s22 + $0xb0] sm:$0xff] %v1411_v7  ;;  %v620_v24 = vmul.f32 %v910_v3, %v910_v3 }
 0x136   : > { %v434_v8 = vpop.f32.mrf.mxu0  ;;  %v1416_v12 = vpop.f32.mrf.mxu1 }
 0x137   : > { %v647_v10 = vadd.f32 %v646_v6, %v616_v4  ;;  %549 = vst [vmem:[%s1388_s22 + $0x20] sm:$0xff] %v434_v8  ;;  %v579_v11 = vadd.f32 %v907_v60, %v578_v5  ;;  %565 = vst [vmem:[%s1388_s22 + $0xa0] sm:$0xff] %v1416_v12  ;;  %v618_v15 = vmul.f32 %v434_v8, %v434_v8 }
 0x138   : > { %v911_v13 = vpop.f32.mrf.mxu0  ;;  %v1421_v17 = vpop.f32.mrf.mxu1 }
 0x139   : > { %v580_v14 = vadd.f32 %v579_v11, %v434_v8  ;;  %v648_v16 = vadd.f32 %v647_v10, %v617_v9  ;;  %552 = vst [vmem:[%s1388_s22 + $0x38] sm:$0xff] %v911_v13  ;;  %568 = vst [vmem:[%s1388_s22 + $0xb8] sm:$0xff] %v1421_v17  ;;  %v621_v29 = vmul.f32 %v911_v13, %v911_v13 }
 0x13a   : > { %v437_v18 = vpop.f32.mrf.mxu0  ;;  %v1426_v22 = vpop.f32.mrf.mxu1 }
 0x13b   : > { %v649_v19 = vadd.f32 %v648_v16, %v618_v15  ;;  %550 = vst [vmem:[%s1388_s22 + $0x28] sm:$0xff] %v437_v18  ;;  %v581_v20 = vadd.f32 %v580_v14, %v437_v18  ;;  %v619_v21 = vmul.f32 %v437_v18, %v437_v18  ;;  %566 = vst [vmem:[%s1388_s22 + $0xa8] sm:$0xff] %v1426_v22 }
 0x13c   : > { %v914_v23 = vpop.f32.mrf.mxu0  ;;  %v1431_v27 = vpop.f32.mrf.mxu1 }
 0x13d   : > { %v582_v25 = vadd.f32 %v910_v3, %v581_v20  ;;  %v650_v26 = vadd.f32 %v649_v19, %v619_v21  ;;  %555 = vst [vmem:[%s1388_s22 + $0x50] sm:$0xff] %v914_v23  ;;  %571 = vst [vmem:[%s1388_s22 + $0xd0] sm:$0xff] %v1431_v27  ;;  %v624_v44 = vmul.f32 %v914_v23, %v914_v23 }
 0x13e   : > { %v450_v28 = vpop.f32.mrf.mxu0  ;;  %v1436_v32 = vpop.f32.mrf.mxu1 }
 0x13f   : > { %v651_v30 = vadd.f32 %v650_v26, %v620_v24  ;;  %553 = vst [vmem:[%s1388_s22 + $0x40] sm:$0xff] %v450_v28  ;;  %v583_v31 = vadd.f32 %v911_v13, %v582_v25  ;;  %569 = vst [vmem:[%s1388_s22 + $0xc0] sm:$0xff] %v1436_v32  ;;  %v622_v35 = vmul.f32 %v450_v28, %v450_v28 }
 0x140   : > { %v915_v33 = vpop.f32.mrf.mxu0  ;;  %v1441_v37 = vpop.f32.mrf.mxu1 }
 0x141   : > { %v584_v34 = vadd.f32 %v583_v31, %v450_v28  ;;  %v652_v36 = vadd.f32 %v651_v30, %v621_v29  ;;  %556 = vst [vmem:[%s1388_s22 + $0x58] sm:$0xff] %v915_v33  ;;  %572 = vst [vmem:[%s1388_s22 + $0xd8] sm:$0xff] %v1441_v37  ;;  %v625_v49 = vmul.f32 %v915_v33, %v915_v33 }
 0x142   : > { %v453_v38 = vpop.f32.mrf.mxu0  ;;  %v1446_v42 = vpop.f32.mrf.mxu1 }
 0x143   : > { %v653_v39 = vadd.f32 %v652_v36, %v622_v35  ;;  %554 = vst [vmem:[%s1388_s22 + $0x48] sm:$0xff] %v453_v38  ;;  %v585_v40 = vadd.f32 %v584_v34, %v453_v38  ;;  %v623_v41 = vmul.f32 %v453_v38, %v453_v38  ;;  %570 = vst [vmem:[%s1388_s22 + $0xc8] sm:$0xff] %v1446_v42 }
 0x144   : > { %v918_v43 = vpop.f32.mrf.mxu0  ;;  %v1451_v47 = vpop.f32.mrf.mxu1 }
 0x145   : > { %v586_v45 = vadd.f32 %v914_v23, %v585_v40  ;;  %v654_v46 = vadd.f32 %v653_v39, %v623_v41  ;;  %559 = vst [vmem:[%s1388_s22 + $0x70] sm:$0xff] %v918_v43  ;;  %575 = vst [vmem:[%s1388_s22 + $0xf0] sm:$0xff] %v1451_v47  ;;  %v628_v3 = vmul.f32 %v918_v43, %v918_v43 }
 0x146   : > { %v466_v48 = vpop.f32.mrf.mxu0  ;;  %v1458_v52 = vpop.f32.mrf.mxu1 }
 0x147   : > { %v655_v50 = vadd.f32 %v654_v46, %v624_v44  ;;  %557 = vst [vmem:[%s1388_s22 + $0x60] sm:$0xff] %v466_v48  ;;  %v587_v51 = vadd.f32 %v915_v33, %v586_v45  ;;  %573 = vst [vmem:[%s1388_s22 + $0xe0] sm:$0xff] %v1458_v52  ;;  %v626_v55 = vmul.f32 %v466_v48, %v466_v48 }
 0x148   : > { %v919_v53 = vpop.f32.mrf.mxu0  ;;  %v1463_v58 = vpop.f32.mrf.mxu1 }
 0x149   : > { %v588_v54 = vadd.f32 %v587_v51, %v466_v48  ;;  %v656_v56 = vadd.f32 %v655_v50, %v625_v49  ;;  %560 = vst [vmem:[%s1388_s22 + $0x78] sm:$0xff] %v919_v53  ;;  %576 = vst [vmem:[%s1388_s22 + $0xf8] sm:$0xff] %v1463_v58 }
 0x14a   : > { %v469_v60 = vpop.f32.mrf.mxu0  ;;  %v1475_v1 = vpop.f32.mrf.mxu1 }
 0x14b   : > { %v657_v62 = vadd.f32 %v656_v56, %v626_v55  ;;  %558 = vst [vmem:[%s1388_s22 + $0x68] sm:$0xff] %v469_v60  ;;  %v589_v63 = vadd.f32 %v588_v54, %v469_v60  ;;  %v627_v0 = vmul.f32 %v469_v60, %v469_v60  ;;  %574 = vst [vmem:[%s1388_s22 + $0xe8] sm:$0xff] %v1475_v1 }
 0x14d   : > { %v590_v4 = vadd.f32 %v918_v43, %v589_v63  ;;  %v658_v5 = vadd.f32 %v657_v62, %v627_v0 }
 0x14e   : > { %1095 = shalt.err (!%p1092_p0)
}
 0x14f   : > { %s1096_s16 = scalar_lea.hbm %s1468_s29, 4096  ;;  %s1100_s6 = scalar_lea.hbm %s1596_s4, 8192 }
 0x150   : > { %p1097_p5 = scmp.ne.s32.totalorder %s1468_s29, %s1096_s16  ;;  %p1101_p4 = scmp.lt.s32.totalorder %s1468_s29, %s1596_s4 }
 0x151   : > { %p1102_p6 = scmp.lt.s32.totalorder %s1100_s6, %s1096_s16 }
 0x152   : > { %p1098_p9 = pnand %p1097_p5, %p1613_p11 }
 0x153   : > { %p1103_p8 = por %p1102_p6, %p1101_p4 }
 0x154   : > { %p1099_p1 = pneg %p1098_p9 }
 0x156   : > { %p1104_p3 = pnand %p1103_p8, %p1099_p1 }
 0x158   : > { %1107 = shalt.err (!%p1104_p3)
}
 0x159   : > { %s1189_s22 = smov 128   ;;  %s1190_s24 = smov 8   ;;  %v629_v6 = vmul.f32 %v919_v53, %v919_v53  ;;  %v591_v8 = vadd.f32 %v919_v53, %v590_v4  ;;  %v659_v9 = vadd.f32 %v658_v5, %v628_v3  ;;  %v630_v10 = vmul.f32 %v1396_v59, %v1396_v59 }
 0x15a   : > { %958 = dma.vmem_to_hbm [thread:$0]  (%p1613_p11), %s1470_s21, 4096, %s1468_s29, %s689_s9, %s1189_s22, %s1189_s22, %s1190_s24   ;;  %v631_v15 = vmul.f32 %v1406_v2, %v1406_v2  ;;  %v632_v18 = vmul.f32 %v1391_v57, %v1391_v57  ;;  %v633_v21 = vmul.f32 %v1401_v61, %v1401_v61  ;;  %v634_v25 = vmul.f32 %v1416_v12, %v1416_v12 }
 0x15b   : > { %v660_v11 = vadd.f32 %v659_v9, %v629_v6  ;;  %v592_v13 = vadd.f32 %v591_v8, %v1396_v59  ;;  %v635_v29 = vmul.f32 %v1426_v22, %v1426_v22  ;;  %v638_v35 = vmul.f32 %v1436_v32, %v1436_v32  ;;  %s846_s21 = sshll.u32 %s1338_s30, 3  ;;  %s859_s26 = sshll.u32 %s1243_s20, 7 }
 0x15c   : > { %v639_v39 = vmul.f32 %v1446_v42, %v1446_v42  ;;  %v642_v45 = vmul.f32 %v1458_v52, %v1458_v52  ;;  %v644_v49 = vmul.f32 %v1451_v47, %v1451_v47  ;;  %vm683_vm0 = vcmask 1040384   ;;  %s268_s27 = scalar_lea.vmem [#allocation8], %s846_s21  ;;  %s1555_s13 = scalar_lea.hbm %s1597_s5, %s859_s26 }
 0x15d   : > { %v593_v14 = vadd.f32 %v592_v13, %v1406_v2  ;;  %v661_v16 = vadd.f32 %v660_v11, %v630_v10  ;;  %s723_s29 = sshll.u32 %s268_s27, 4  ;;  %vm685_vm1 = vcmask 1041408   ;;  %s694_s14 = scalar_lea.sflag [#allocation9], %s1338_s30  ;;  %s724_s29 = int_to_ptr.vmem [resolvable:$true] %s723_s29 }
 0x15e   : > { %s1108_s15 = scalar_lea.vmem %s724_s29, 128  ;;  %s1191_s20 = smov [#allocation8]  }
 0x15f   : > { %v594_v19 = vadd.f32 %v1391_v57, %v593_v14  ;;  %v662_v20 = vadd.f32 %v661_v16, %v631_v15  ;;  %v636_v57 = vmul.f32 %v1411_v7, %v1411_v7  ;;  %p1109_p7 = scmp.ne.s32.totalorder %s724_s29, %s1108_s15  ;;  %s1112_s16 = sshll.u32 %s1191_s20, 4  ;;  %s1113_s16 = int_to_ptr.vmem [resolvable:$false] %s1112_s16 }
 0x160   : > { %s1114_s17 = scalar_lea.vmem %s1113_s16, 256  ;;  %p1115_p2 = scmp.lt.s32.totalorder %s724_s29, %s1113_s16 }
 0x161   : > { %v663_v23 = vadd.f32 %v662_v20, %v632_v18  ;;  %v595_v24 = vadd.f32 %v1401_v61, %v594_v19  ;;  %v637_v61 = vmul.f32 %v1421_v17, %v1421_v17  ;;  %p1110_p12 = pnand %p1109_p7, %p1613_p11  ;;  %p1116_p13 = scmp.lt.s32.totalorder %s1114_s17, %s1108_s15 }
 0x163   : > { %v596_v59 = vadd.f32 %v595_v24, %v1416_v12  ;;  %v664_v26 = vadd.f32 %v663_v23, %v633_v21  ;;  %p1111_p10 = pneg %p1110_p12  ;;  %p1117_p0 = por %p1116_p13, %p1115_p2 }
 0x165   : > { %v665_v2 = vadd.f32 %v664_v26, %v634_v25  ;;  %v597_v28 = vadd.f32 %v596_v59, %v1426_v22  ;;  %p1118_p5 = pnand %p1117_p0, %p1111_p10 }
 0x167   : > { %v598_v30 = vadd.f32 %v1411_v7, %v597_v28  ;;  %v666_v31 = vadd.f32 %v665_v2, %v635_v29  ;;  %v640_v7 = vmul.f32 %v1431_v27, %v1431_v27 }
 0x169   : > { %v667_v33 = vadd.f32 %v666_v31, %v636_v57  ;;  %v599_v34 = vadd.f32 %v1421_v17, %v598_v30  ;;  %v641_v17 = vmul.f32 %v1441_v37, %v1441_v37 }
 0x16b   : > { %v600_v12 = vadd.f32 %v599_v34, %v1436_v32  ;;  %v668_v36 = vadd.f32 %v667_v33, %v637_v61 }
 0x16d   : > { %v669_v38 = vadd.f32 %v668_v36, %v638_v35  ;;  %v601_v22 = vadd.f32 %v600_v12, %v1446_v42 }
 0x16f   : > { %v602_v40 = vadd.f32 %v1431_v27, %v601_v22  ;;  %v670_v41 = vadd.f32 %v669_v38, %v639_v39  ;;  %v643_v27 = vmul.f32 %v1475_v1, %v1475_v1 }
 0x171   : > { %v671_v43 = vadd.f32 %v670_v41, %v640_v7  ;;  %v603_v44 = vadd.f32 %v1441_v37, %v602_v40  ;;  %v645_v37 = vmul.f32 %v1463_v58, %v1463_v58 }
 0x173   : > { %v604_v32 = vadd.f32 %v603_v44, %v1458_v52  ;;  %v672_v46 = vadd.f32 %v671_v43, %v641_v17 }
 0x175   : > { %v673_v42 = vadd.f32 %v672_v46, %v642_v45  ;;  %v605_v48 = vadd.f32 %v604_v32, %v1475_v1 }
 0x177   : > { %v606_v50 = vadd.f32 %v1451_v47, %v605_v48  ;;  %v674_v51 = vadd.f32 %v673_v42, %v643_v27 }
 0x179   : > { %v607_v52 = vadd.f32 %v1463_v58, %v606_v50  ;;  %v675_v53 = vadd.f32 %v674_v51, %v644_v49 }
 0x17b   : > { %v608_v54 = vrot.slane %v607_v52, 4  ;;  %v676_v55 = vadd.f32 %v675_v53, %v645_v37 }
 0x17d   : > { %v609_v56 = vadd.f32 %v608_v54, %v607_v52  ;;  %v677_v60 = vrot.slane %v676_v55, 4 }
 0x17f   : > { %v610_v62 = vrot.slane %v609_v56, 2  ;;  %v678_v63 = vadd.f32 %v677_v60, %v676_v55 }
 0x181   : > { %v611_v0 = vadd.f32 %v610_v62, %v609_v56  ;;  %v679_v1 = vrot.slane %v678_v63, 2 }
 0x183   : > { %v612_v3 = vrot.slane %v611_v0, 1  ;;  %v680_v47 = vadd.f32 %v679_v1, %v678_v63 }
 0x185   : > { %v681_v4 = vrot.slane %v680_v47, 1  ;;  %v613_v58 = vadd.f32 %v612_v3, %v611_v0 }
 0x187   : > { %v682_v5 = vadd.f32 %v681_v4, %v680_v47 }
 0x189   : > { %v684_v6 = vsel %vm683_vm0, %v613_v58, %v682_v5 }
 0x18a   : > { %v686_v8 = vsel %vm685_vm1, %v684_v6, 0.0 }
 0x18b   : > { %687 = vst [vmem:[%s268_s27] sm:$0xff] %v686_v8 }
 0x18c   : > { %1121 = shalt.err (!%p1118_p5)
}
 0x18d   : > { %s1122_s25 = scalar_lea.hbm %s1555_s13, 128  ;;  %s1126_s7 = scalar_lea.hbm %s1597_s5, 256 }
 0x18e   : > { %p1123_p9 = scmp.ne.s32.totalorder %s1555_s13, %s1122_s25  ;;  %p1127_p6 = scmp.lt.s32.totalorder %s1555_s13, %s1597_s5 }
 0x18f   : > { %p1128_p8 = scmp.lt.s32.totalorder %s1126_s7, %s1122_s25 }
 0x190   : > { %p1124_p1 = pnand %p1123_p9, %p1613_p11 }
 0x191   : > { %p1129_p3 = por %p1128_p8, %p1127_p6 }
 0x192   : > { %p1125_p4 = pneg %p1124_p1 }
 0x194   : > { %p1130_p7 = pnand %p1129_p3, %p1125_p4 }
 0x196   : > { %1133 = shalt.err (!%p1130_p7)
}
 0x197   : > { %959 = dma.vmem_to_hbm [thread:$0]  (%p1613_p11), %s724_s29, 128, %s1555_s13, %s694_s14  }
 0x198 PF: > { %s735_s24 = sand.u32 1, %s1168_s1   ;;  %p1614_p12 = scmp.ne.s32.totalorder %s1603_s23, 0 }
 0x199   : > { %p1615_p10 = scmp.ge.s32.totalorder %s1180_s19, 2  ;;  %s736_s21 = scalar_lea.sflag [#allocation4], %s735_s24 }
 0x19b   : > { %p971_p2 = pnand %p1615_p10, %p1614_p12 }
 0x19d   : > { %p972_p13 = pneg %p971_p2 }
 0x19f   : > { %1159 = dma.done.wait (%p972_p13), %s736_s21, 4096  }
 0x1a0   : > { %1161 = vsyncadd (%p972_p13), %s736_s21, 4294963200  ;;  %s745_s26 = scalar_lea.sflag [#allocation9], %s735_s24 }
 0x1a1   : > { %1163 = dma.done.wait (%p972_p13), %s745_s26, 128  }
 0x1a2   : > { %1165 = vsyncadd (%p972_p13), %s745_s26, 4294967168  ;;  %p23_p11 = scmp.ge.s32.totalorder %s1276_s28, 4   ;;  %s1616_s1 = smov %s1172_s18 }
 0x1a3   : > { %s1617_s18 = smov %s1176_s2  ;;  %s1618_s2 = smov %s1293_s11 }
 0x1a4   : > { %s1619_s19 = smov %s1276_s28  ;;  %25 = sbr.rel (!%p23_p11) target bundleno = 8 (0x8), region = 102 }
 0x1a9   :  { %750 = vsyncpa [#allocation3], 1 }
 0x1aa   :  { %752 = vsyncpa [#allocation3 + $0x1], 1 }
 0x1ab   :  { %753 = vsyncpa [#allocation6], 1 }
 0x1ac   :  { %754 = vsyncpa [#allocation4], 1 }
 0x1ad   :  { %756 = vsyncpa [#allocation4 + $0x1], 1 }
 0x1ae   :  { %757 = vsyncpa [#allocation9], 1 }
 0x1af   :  { %759 = vsyncpa [#allocation9 + $0x1], 1 }

</bundles_post_ra>
